<compile_context>
chip_gen: v7x
topology: tpu7x:2x2x1
jax: 0.10.0
libtpu: 0.0.40
codegen_flags: <defaults>
</compile_context>

<pallas_src>
import functools

import jax
import jax.numpy as jnp
from jax import lax
from jax.experimental import pallas as pl
from jax.experimental.pallas import tpu as pltpu


def _gather_rows_kernel(ids_ref, w_ref, o_ref, rowbuf, sems, *, tn, num_inner):
    """Double-buffered DMA row gather for one (outer, inner) grid step.

    ids_ref: (N_pad,) int32 global vocab indices in SMEM (scalar prefetch)
    w_ref:   (num_embeddings, E) full weight table, left in HBM (pl.ANY)
    o_ref:   (TN, E) output block (weight dtype)
    rowbuf:  (2, TN, E) VMEM landing buffer (double buffer)
    sems:    (2,) DMA semaphores, one per buffer slot
    """
    outer = pl.program_id(0)            # "parallel" axis (megacore on v7x)
    inner = pl.program_id(1)            # "arbitrary" axis (sequential per core)
    blk = outer * num_inner + inner     # global TN-block index
    slot = lax.rem(inner, 2)

    def issue(block_idx, slot_idx):
        base = block_idx * tn

        @pl.loop(0, tn)
        def _(t):
            row = ids_ref[base + t]                      # scalar read from SMEM
            pltpu.make_async_copy(
                w_ref.at[pl.ds(row, 1), :],              # one (1, E) row from HBM
                rowbuf.at[slot_idx, pl.ds(t, 1), :],
                sems.at[slot_idx],
            ).start()

    # Prime the pipeline at the start of each outer chunk (each core's range).
    @pl.when(inner == 0)
    def _():
        issue(blk, 0)                                    # inner==0 -> slot 0

    # Prefetch the next block of this chunk into the other slot BEFORE waiting
    # on the current one, so its HBM latency is hidden behind this step.
    @pl.when(inner + 1 < num_inner)
    def _():
        issue(blk + 1, 1 - slot)

    # Grouped wait: TN copies of (1, E) == one descriptor worth (TN, E) bytes.
    pltpu.make_async_copy(rowbuf.at[slot], rowbuf.at[slot], sems.at[slot]).wait()

    # Single vectorized whole-tile store.
    o_ref[...] = rowbuf[slot].astype(o_ref.dtype)


def _round_up(x, m):
    return (x + m - 1) // m * m


def vocab_sharded_embedding_forward(x, full_weight, world_size, *, tn=128):
    """Emulates VocabShardedEmbedding.forward across a gang of `world_size`.

    x:           integer indices, any shape, values in [0, num_embeddings)
    full_weight: (num_embeddings, embedding_dim) table (pad row already zeroed)
    returns:     (*x.shape, embedding_dim) in the weight dtype
    """
    num_embeddings, embedding_dim = full_weight.shape
    if num_embeddings % world_size != 0:
        raise ValueError("num_embeddings must be a multiple of world_size")
    # NOTE: on a single device the per-rank mask + `reduce(x, gang)` is exactly
    # a gather from the concatenated table; world_size only enters through the
    # divisibility check (mirrors VocabShardedEmbedding.__init__).

    flat = x.reshape(-1).astype(jnp.int32)
    n = flat.shape[0]

    # Token-block size: large enough to amortize per-step overhead, capped for
    # tiny inputs so padded-tail DMAs stay negligible.  Multiple of 8 for the
    # (8,128) layout constraint on the output block.
    tn_eff = max(8, min(int(tn), _round_up(n, 8)))
    n_pad = _round_up(n, tn_eff)
    if n_pad != n:
        flat = jnp.pad(flat, (0, n_pad - n))  # pad rows sliced off below
        # TODO(synk): skip DMAs for padded tail tokens instead of gathering row 0.
    num_blocks = n_pad // tn_eff

    # outer ("parallel") x inner ("arbitrary") split: outer=2 lets both v7x
    # TensorCores work; the DMA double-buffer is primed per outer chunk.
    if num_blocks >= 2 and num_blocks % 2 == 0:
        num_outer, num_inner = 2, num_blocks // 2
    else:
        num_outer, num_inner = 1, num_blocks

    out_dtype = full_weight.dtype
    w_itemsize = jnp.dtype(full_weight.dtype).itemsize
    out_itemsize = jnp.dtype(out_dtype).itemsize

    # VMEM: double-buffered rowbuf + Pallas' double-buffered output tile.
    # Cap at 48 MiB so the budget also fits v7x's 64 MiB VMEM per TensorCore.
    vmem_need = 2 * tn_eff * embedding_dim * (w_itemsize + out_itemsize)
    vmem_limit = int(min(48 * 1024 * 1024, max(16 * 1024 * 1024, 4 * vmem_need)))

    kernel = functools.partial(_gather_rows_kernel, tn=tn_eff, num_inner=num_inner)

    out = pl.pallas_call(
        kernel,
        out_shape=jax.ShapeDtypeStruct((n_pad, embedding_dim), out_dtype),
        grid_spec=pltpu.PrefetchScalarGridSpec(
            num_scalar_prefetch=1,                         # indices -> SMEM
            grid=(num_outer, num_inner),
            in_specs=[pl.BlockSpec(memory_space=pl.ANY)],  # weights stay in HBM
            out_specs=pl.BlockSpec(
                (tn_eff, embedding_dim),
                lambda o, i, ids: (o * num_inner + i, 0),
            ),
            scratch_shapes=[
                pltpu.VMEM((2, tn_eff, embedding_dim), full_weight.dtype),
                pltpu.SemaphoreType.DMA((2,)),
            ],
        ),
        compiler_params=pltpu.CompilerParams(
            dimension_semantics=("parallel", "arbitrary"),
            vmem_limit_bytes=vmem_limit,
        ),
        cost_estimate=pl.CostEstimate(
            flops=0,                                        # pure gather
            transcendentals=0,
            bytes_accessed=n_pad * embedding_dim * (w_itemsize + out_itemsize)
            + n_pad * 4,
        ),
    )(flat, full_weight)

    return out[:n].reshape(*x.shape, embedding_dim)


if __name__ == "__main__":
    key = jax.random.PRNGKey(0)

    # Module configuration (small, consistent with the module's __init__).
    num_embeddings = 64
    embedding_dim = 128
    world_size = 2          # gang.size
    pad_idx = 0

    # Deterministic init mirroring StandardEmbedding.reset_parameters:
    # normal init, then zero the pad_idx row.
    k_w, k_x1, k_x2, k_x3 = jax.random.split(key, 4)
    full_weight = jax.random.normal(
        k_w, (num_embeddings, embedding_dim), jnp.float32
    )
    full_weight = full_weight.at[pad_idx].set(0.0)

    # Case 1: tiny batch (batch=2, seq=8) — single grid step.
    x1 = jax.random.randint(k_x1, (2, 8), 0, num_embeddings, dtype=jnp.int32)
    x1 = x1.at[0, 0].set(pad_idx)  # exercise the pad row
    out1 = jax.block_until_ready(
        vocab_sharded_embedding_forward(x1, full_weight, world_size)
    )
    ref1 = full_weight[x1]
    assert out1.shape == (2, 8, embedding_dim)
    assert jnp.allclose(out1, ref1, atol=1e-5, rtol=1e-5), "case1 mismatch"

    # Case 2: odd number of TN blocks — exercises the prime/prefetch pipeline.
    x2 = jax.random.randint(k_x2, (4, 96), 0, num_embeddings, dtype=jnp.int32)
    out2 = jax.block_until_ready(
        vocab_sharded_embedding_forward(x2, full_weight, world_size)
    )
    assert jnp.allclose(out2, full_weight[x2], atol=1e-5, rtol=1e-5), "case2 mismatch"

    # Case 3: even number of TN blocks — exercises the outer/inner grid split.
    x3 = jax.random.randint(k_x3, (4, 128), 0, num_embeddings, dtype=jnp.int32)
    out3 = jax.block_until_ready(
        vocab_sharded_embedding_forward(x3, full_weight, world_size)
    )
    assert jnp.allclose(out3, full_weight[x3], atol=1e-5, rtol=1e-5), "case3 mismatch"

    print("KERNEL_OK")
</pallas_src>

<mosaic_0001>
module attributes {stable_mosaic.version = 11 : i64} {
  func.func @_gather_rows_kernel(%arg0: i32, %arg1: i32, %arg2: memref<16xi32, #tpu.memory_space<smem>>, %arg3: memref<64x128xf32, #tpu.memory_space<any>>, %arg4: memref<16x128xf32, #tpu.memory_space<vmem>>, %arg5: memref<2x16x128xf32, #tpu.memory_space<vmem>>, %arg6: memref<2x!tpu.dma_semaphore, #tpu.memory_space<semaphore_mem>>) attributes {dimension_semantics = [#tpu.dimension_semantics<parallel>, #tpu.dimension_semantics<arbitrary>], iteration_bounds = array<i64: 1, 1>, scalar_prefetch = 1 : i64, scratch_operands = 2 : i64, tpu.core_type = #tpu.core_type<tc>, window_params = [{}, {transform_indices = @transform_1, window_bounds = array<i64: 16, 128>}]} {
    %c1_i32 = arith.constant 1 : i32
    %0 = arith.muli %arg0, %c1_i32 : i32
    %1 = arith.addi %0, %arg1 : i32
    %c2_i32 = arith.constant 2 : i32
    %2 = arith.remsi %arg1, %c2_i32 : i32
    %c0_i32 = arith.constant 0 : i32
    %3 = arith.cmpi eq, %arg1, %c0_i32 : i32
    %4 = arith.extui %3 : i1 to i32
    %c0_i32_0 = arith.constant 0 : i32
    %5 = arith.cmpi ne, %4, %c0_i32_0 : i32
    scf.if %5 {
      %c16_i32 = arith.constant 16 : i32
      %20 = arith.muli %1, %c16_i32 : i32
      %c0_i32_11 = arith.constant 0 : i32
      %c16_i32_12 = arith.constant 16 : i32
      %21 = arith.addi %c0_i32_11, %c16_i32_12 : i32
      %c1_i32_13 = arith.constant 1 : i32
      scf.for %arg7 = %c0_i32_11 to %21 step %c1_i32_13  : i32 {
        %c1_i32_15 = arith.constant 1 : i32
        %22 = arith.muli %arg7, %c1_i32_15 : i32
        %c0_i32_16 = arith.constant 0 : i32
        %23 = arith.addi %c0_i32_16, %22 : i32
        %24 = arith.addi %20, %23 : i32
        %25 = arith.index_cast %24 : i32 to index
        %26 = memref.load %arg2[%25] : memref<16xi32, #tpu.memory_space<smem>>
        %c0_i32_17 = arith.constant 0 : i32
        %c0_i32_18 = arith.constant 0 : i32
        %c0_i32_19 = arith.constant 0 : i32
        %27 = tpu.memref_slice %arg3[%26, %c0_i32_19] : memref<64x128xf32, #tpu.memory_space<any>> -> memref<1x128xf32, #tpu.memory_space<any>>
        %c0_i32_20 = arith.constant 0 : i32
        %28 = tpu.memref_slice %arg5[%c0_i32_17, %23, %c0_i32_20] : memref<2x16x128xf32, #tpu.memory_space<vmem>> -> memref<1x1x128xf32, #tpu.memory_space<vmem>>
        %29 = tpu.memref_squeeze %28 : memref<1x1x128xf32, #tpu.memory_space<vmem>> -> memref<1x128xf32, #tpu.memory_space<vmem>>
        %30 = tpu.memref_slice %arg6[%c0_i32_18] : memref<2x!tpu.dma_semaphore, #tpu.memory_space<semaphore_mem>> -> memref<1x!tpu.dma_semaphore, #tpu.memory_space<semaphore_mem>>
        %31 = tpu.memref_squeeze %30 : memref<1x!tpu.dma_semaphore, #tpu.memory_space<semaphore_mem>> -> memref<!tpu.dma_semaphore, #tpu.memory_space<semaphore_mem>>
        tpu.enqueue_dma source(%27 : memref<1x128xf32, #tpu.memory_space<any>>) target(%29 : memref<1x128xf32, #tpu.memory_space<vmem>>) target_semaphore(%31 : memref<!tpu.dma_semaphore, #tpu.memory_space<semaphore_mem>>)
      }
      %c16_i32_14 = arith.constant 16 : i32
    } else {
    }
    %c1_i32_1 = arith.constant 1 : i32
    %6 = arith.addi %arg1, %c1_i32_1 : i32
    %c1_i32_2 = arith.constant 1 : i32
    %7 = arith.cmpi slt, %6, %c1_i32_2 : i32
    %8 = arith.extui %7 : i1 to i32
    %c0_i32_3 = arith.constant 0 : i32
    %9 = arith.cmpi ne, %8, %c0_i32_3 : i32
    scf.if %9 {
      %c1_i32_11 = arith.constant 1 : i32
      %20 = arith.addi %1, %c1_i32_11 : i32
      %c1_i32_12 = arith.constant 1 : i32
      %21 = arith.subi %c1_i32_12, %2 : i32
      %c16_i32 = arith.constant 16 : i32
      %22 = arith.muli %20, %c16_i32 : i32
      %c0_i32_13 = arith.constant 0 : i32
      %c16_i32_14 = arith.constant 16 : i32
      %23 = arith.addi %c0_i32_13, %c16_i32_14 : i32
      %c1_i32_15 = arith.constant 1 : i32
      scf.for %arg7 = %c0_i32_13 to %23 step %c1_i32_15  : i32 {
        %c1_i32_17 = arith.constant 1 : i32
        %24 = arith.muli %arg7, %c1_i32_17 : i32
        %c0_i32_18 = arith.constant 0 : i32
        %25 = arith.addi %c0_i32_18, %24 : i32
        %26 = arith.addi %22, %25 : i32
        %27 = arith.index_cast %26 : i32 to index
        %28 = memref.load %arg2[%27] : memref<16xi32, #tpu.memory_space<smem>>
        %c0_i32_19 = arith.constant 0 : i32
        %29 = tpu.memref_slice %arg3[%28, %c0_i32_19] : memref<64x128xf32, #tpu.memory_space<any>> -> memref<1x128xf32, #tpu.memory_space<any>>
        %c0_i32_20 = arith.constant 0 : i32
        %30 = tpu.memref_slice %arg5[%21, %25, %c0_i32_20] : memref<2x16x128xf32, #tpu.memory_space<vmem>> -> memref<1x1x128xf32, #tpu.memory_space<vmem>>
        %31 = tpu.memref_squeeze %30 : memref<1x1x128xf32, #tpu.memory_space<vmem>> -> memref<1x128xf32, #tpu.memory_space<vmem>>
        %32 = tpu.memref_slice %arg6[%21] : memref<2x!tpu.dma_semaphore, #tpu.memory_space<semaphore_mem>> -> memref<1x!tpu.dma_semaphore, #tpu.memory_space<semaphore_mem>>
        %33 = tpu.memref_squeeze %32 : memref<1x!tpu.dma_semaphore, #tpu.memory_space<semaphore_mem>> -> memref<!tpu.dma_semaphore, #tpu.memory_space<semaphore_mem>>
        tpu.enqueue_dma source(%29 : memref<1x128xf32, #tpu.memory_space<any>>) target(%31 : memref<1x128xf32, #tpu.memory_space<vmem>>) target_semaphore(%33 : memref<!tpu.dma_semaphore, #tpu.memory_space<semaphore_mem>>)
      }
      %c16_i32_16 = arith.constant 16 : i32
    } else {
    }
    %c0_i32_4 = arith.constant 0 : i32
    %c0_i32_5 = arith.constant 0 : i32
    %10 = tpu.memref_slice %arg5[%2, %c0_i32_4, %c0_i32_5] : memref<2x16x128xf32, #tpu.memory_space<vmem>> -> memref<1x16x128xf32, #tpu.memory_space<vmem>>
    %11 = tpu.memref_squeeze %10 : memref<1x16x128xf32, #tpu.memory_space<vmem>> -> memref<16x128xf32, #tpu.memory_space<vmem>>
    %c0_i32_6 = arith.constant 0 : i32
    %c0_i32_7 = arith.constant 0 : i32
    %12 = tpu.memref_slice %arg5[%2, %c0_i32_6, %c0_i32_7] : memref<2x16x128xf32, #tpu.memory_space<vmem>> -> memref<1x16x128xf32, #tpu.memory_space<vmem>>
    %13 = tpu.memref_squeeze %12 : memref<1x16x128xf32, #tpu.memory_space<vmem>> -> memref<16x128xf32, #tpu.memory_space<vmem>>
    %14 = tpu.memref_slice %arg6[%2] : memref<2x!tpu.dma_semaphore, #tpu.memory_space<semaphore_mem>> -> memref<1x!tpu.dma_semaphore, #tpu.memory_space<semaphore_mem>>
    %15 = tpu.memref_squeeze %14 : memref<1x!tpu.dma_semaphore, #tpu.memory_space<semaphore_mem>> -> memref<!tpu.dma_semaphore, #tpu.memory_space<semaphore_mem>>
    tpu.wait_dma2 semaphore(%15 : memref<!tpu.dma_semaphore, #tpu.memory_space<semaphore_mem>>) src(%11 : memref<16x128xf32, #tpu.memory_space<vmem>>) dst(%13 : memref<16x128xf32, #tpu.memory_space<vmem>>)
    %16 = arith.index_cast %2 : i32 to index
    %c0 = arith.constant 0 : index
    %c0_8 = arith.constant 0 : index
    %17 = vector.load %arg5[%16, %c0, %c0_8] : memref<2x16x128xf32, #tpu.memory_space<vmem>>, vector<1x16x128xf32>
    %18 = vector.shape_cast %17 : vector<1x16x128xf32> to vector<16x128xf32>
    %c0_9 = arith.constant 0 : index
    %c0_10 = arith.constant 0 : index
    %19 = vector.load %arg4[%c0_9, %c0_10] : memref<16x128xf32, #tpu.memory_space<vmem>>, vector<16x128xf32>
    tpu.vector_store %arg4[%c0_9, %c0_10], %18 {strides = array<i32>} : memref<16x128xf32, #tpu.memory_space<vmem>>, vector<16x128xf32>,
    return
  }
  func.func @transform_1(%arg0: i32, %arg1: i32, %arg2: memref<16xi32, #tpu.memory_space<smem>>) -> (i32, i32) {
    %c1_i32 = arith.constant 1 : i32
    %0 = arith.muli %arg0, %c1_i32 : i32
    %1 = arith.addi %0, %arg1 : i32
    %c0_i32 = arith.constant 0 : i32
    %c0_i32_0 = arith.constant 0 : i32
    return %1, %c0_i32 : i32, i32
  }
}

</mosaic_0001>

<bundles_post_ra>
// kernel: tpu_custom_call.1
= control target key start
LH: loop header
LB: loop body
LE: loop exit
PB: predicated region body
PF: predicated region fallthrough
CT: control target
= control target key end

     0   :  { %s290_s0 = inlined_call_operand.hbm [shape: s32[16], index: 0, kind: input, shape index: {}]   ;;  %s291_s1 = inlined_call_operand.hbm [shape: f32[64,128], index: 1, kind: input, shape index: {}]   ;;  %s292_s2 = inlined_call_operand.hbm [shape: f32[16,128], index: 2, kind: output, shape index: {}]  }
   0x1   :  { %s157_s11 = scalar_lea.hbm %s290_s0, 16 }
   0x2   :  { %p158_p0 = scmp.ne.s32.totalorder %s290_s0, %s157_s11  ;;  %p161_p1 = scmp.lt.u32.totalorder %s157_s11, %s290_s0 }
   0x4   :  { %p163_p2 = pnand %p161_p1, %p158_p0 }
   0x6   :  { %166 = shalt.err (!%p163_p2)  }
   0x7   :  { %s227_s16 = smov [#allocation5]  }
   0x8   :  { %8 = dma.hbm_to_smem %s290_s0, 16, %s227_s16, [#allocation4] }
   0x9   :  { %217 = dma.done.wait [#allocation4], 16 }
   0xa   :  { %218 = vsyncadd [#allocation4], 4294967280 }
   0xb   :  { %10 = sfence }
   0xc   :  { %11 = vsyncpa [#allocation7], 0  ;;  %s259_s19 = smov 0  }
   0xd LB: > { %s29_s20 = sld [smem:[#allocation5 + %s225_s19]]  ;;  %s32_s21 = scalar_lea.vmem [#allocation2], %s225_s19  ;;  %s225_s19 = sphi %s259_s19, %s27_s19  }
   0xe   : > { %s40_s22 = sshll.u32 %s32_s21, 4  ;;  %s169_s29 = scalar_lea.hbm %s291_s1, 1024  ;;  %s41_s22 = int_to_ptr.vmem [resolvable:$true] %s40_s22 }
  0x13   : > { %s138_s23 = sshll.u32 %s29_s20, 4 }
  0x14   : > { %s31_s25 = scalar_lea.hbm %s291_s1, %s138_s23 }
  0x15   : > { %s167_s26 = scalar_lea.hbm %s31_s25, 16  ;;  %p170_p4 = scmp.lt.u32.totalorder %s31_s25, %s291_s1 }
  0x16   : > { %p168_p3 = scmp.ne.s32.totalorder %s31_s25, %s167_s26  ;;  %p171_p5 = scmp.lt.u32.totalorder %s169_s29, %s167_s26 }
  0x17   : > { %p173_p7 = scmp.lt.u32.totalorder %s167_s26, %s31_s25 }
  0x18   : > { %p172_p6 = por %p171_p5, %p170_p4 }
  0x1a   : > { %p174_p8 = por %p173_p7, %p172_p6 }
  0x1c   : > { %p175_p9 = pnand %p174_p8, %p168_p3 }
  0x1e   : > { %178 = shalt.err (!%p175_p9)  }
  0x1f   : > { %s179_s4 = scalar_lea.vmem %s41_s22, 16  ;;  %s228_s5 = smov [#allocation2]  }
  0x20   : > { %p180_p10 = scmp.ne.s32.totalorder %s41_s22, %s179_s4  ;;  %s181_s6 = sshll.u32 %s228_s5, 4  ;;  %s182_s6 = int_to_ptr.vmem [resolvable:$false] %s181_s6 }
  0x21   : > { %s183_s7 = scalar_lea.vmem %s182_s6, 512  ;;  %p184_p11 = scmp.lt.s32.totalorder %s41_s22, %s182_s6 }
  0x22   : > { %p185_p12 = scmp.lt.s32.totalorder %s183_s7, %s179_s4 }
  0x24   : > { %p186_p13 = por %p185_p12, %p184_p11 }
  0x26   : > { %p187_p0 = pnand %p186_p13, %p180_p10 }
  0x28   : > { %190 = shalt.err (!%p187_p0)  }
  0x29   : > { %43 = dma.hbm_to_vmem [thread:$0]  %s31_s25, 16, %s41_s22, [#allocation3] }
  0x2a   : > { %s27_s19 = sadd.s32 1, %s225_s19  }
  0x2b   : > { %p24_p1 = scmp.ge.s32.totalorder %s27_s19, 16  }
  0x2d   :  { %26 = sbr.rel (!%p24_p1) target bundleno = 13 (0xd), region = 58 }
  0x34   :  { %219 = dma.done.wait [#allocation3], 256 }
  0x35   :  { %220 = vsyncadd [#allocation3], 4294967040  ;;  %s229_s8 = smov [#allocation6]   ;;  %v82_v0 = vld [vmem:[#allocation2] sm:$0xff]  ;;  %v83_v1 = vld [vmem:[#allocation2 + $0x8] sm:$0xff] }
  0x36   :  { %s95_s9 = sshll.u32 %s229_s8, 4  ;;  %84 = vst [vmem:[#allocation6] sm:$0xff] %v82_v0  ;;  %85 = vst [vmem:[#allocation6 + $0x8] sm:$0xff] %v83_v1  ;;  %s96_s9 = int_to_ptr.vmem [resolvable:$true] %s95_s9 }
  0x37   :  { %s191_s10 = scalar_lea.vmem %s96_s9, 256  ;;  %p196_p3 = scmp.lt.s32.totalorder %s96_s9, %s96_s9 }
  0x38   :  { %p192_p2 = scmp.ne.s32.totalorder %s96_s9, %s191_s10  ;;  %p197_p4 = scmp.lt.s32.totalorder %s191_s10, %s191_s10 }
  0x3a   :  { %p198_p5 = por %p197_p4, %p196_p3 }
  0x3c   :  { %p199_p6 = pnand %p198_p5, %p192_p2 }
  0x3e   :  { %202 = shalt.err (!%p199_p6)
}
  0x3f   :  { %s203_s13 = scalar_lea.hbm %s292_s2, 256 }
  0x40   :  { %p204_p7 = scmp.ne.s32.totalorder %s292_s2, %s203_s13  ;;  %p207_p8 = scmp.lt.u32.totalorder %s203_s13, %s292_s2 }
  0x42   :  { %p209_p9 = pnand %p207_p8, %p204_p7 }
  0x44   :  { %212 = shalt.err (!%p209_p9)
}
  0x45   :  { %s230_s17 = smov 128   ;;  %s231_s18 = smov 8  }
  0x46   :  { %101 = dma.vmem_to_hbm [thread:$0]  %s96_s9, 256, %s292_s2, [#allocation7], %s230_s17, %s230_s17, %s231_s18  }
  0x47   :  { %221 = dma.done.wait [#allocation7], 256  }
  0x48   :  { %222 = vsyncadd [#allocation7], 4294967040 }
  0x49   :  { %105 = vsyncpa [#allocation7], 1 }
  0x4a   :  { %106 = vsyncmov [#allocation3] }
  0x4d   :  { %s107_s21 = vpop.sfrf %106 }
  0x4e   :  { %p141_p10 = scmp.ne.s32.totalorder %s107_s21, 0 }
  0x50   :  { %111 = shalt.err (%p141_p10)  }
  0x51   :  { %113 = vsyncmov [#allocation3 + $0x1] }
  0x54   :  { %s114_s22 = vpop.sfrf %113 }
  0x55   :  { %p142_p11 = scmp.ne.s32.totalorder %s114_s22, 0 }
  0x57   :  { %118 = shalt.err (%p142_p11)  }

</bundles_post_ra>
